<compile_context>
chip_gen: v5e
topology: v5e:2x2
jax: 0.10.0
libtpu: 0.0.40
codegen_flags: <defaults>
</compile_context>

<pallas_src>
import functools

import jax
import jax.numpy as jnp
from jax.experimental import pallas as pl
from jax.experimental.pallas import tpu as pltpu


def _elu(x):
    # nn.ELU(alpha=1.0): x if x > 0 else (exp(x) - 1)
    # TODO(synk): switch to jnp.expm1 (slightly better precision near 0, closer to
    # torch) once expm1 is confirmed to have a Mosaic lowering rule; exp(x)-1.0 is
    # guaranteed to lower and matches the in-script JAX reference.
    return jnp.where(x > 0, x, jnp.exp(x) - 1.0)


def mlp_critic_kernel(x_ref, w1_ref, b1_ref, w2_ref, b2_ref, w3_ref, b3_ref,
                      o_ref):
    x = x_ref[...]  # [block_b, D] float32 (no redundant astype)

    h = jnp.dot(x, w1_ref[...], preferred_element_type=jnp.float32) + b1_ref[...]
    h = _elu(h)

    h = jnp.dot(h, w2_ref[...], preferred_element_type=jnp.float32) + b2_ref[...]
    h = _elu(h)

    # Final Linear(H2 -> 1), emitted lane-dense:
    #   (1, H2) @ (H2, block_b) -> (1, block_b)
    # This avoids the N=1 MXU result / masked single-lane store of h @ w3.
    v = jnp.dot(w3_ref[...], h.T, preferred_element_type=jnp.float32) + b3_ref[...]
    o_ref[...] = v.astype(o_ref.dtype)


@functools.partial(jax.jit, static_argnames=("block_b",))
def mlp_critic_forward(x, params, *, block_b=512):
    """x: [B, D] float32. params: dict of w1,b1,w2,b2,w3,b3 (weights [in,out]).

    Returns [B, 1] float32 critic values.
    """
    B, D = x.shape
    w1, b1 = params["w1"], params["b1"]
    w2, b2 = params["w2"], params["b2"]
    w3, b3 = params["w3"], params["b3"]
    H1 = w1.shape[1]
    H2 = w2.shape[1]
    O = w3.shape[1]
    assert O == 1, "MLPCritic value head expects num_outputs == 1"

    # Present the value head as a (1, H2) row + (1, 1) bias so the kernel can
    # produce a lane-dense (1, block_b) output tile.
    w3_row = w3.reshape(1, H2)
    b3_11 = b3.reshape(1, 1)

    if B <= block_b:
        # Small batch: one gridless block, everything resident in VMEM,
        # no pipeline prologue/epilogue.
        out = pl.pallas_call(
            mlp_critic_kernel,
            out_shape=jax.ShapeDtypeStruct((1, B), jnp.float32),
        )(x, w1, b1, w2, b2, w3_row, b3_11)
        return out.reshape(B, 1)

    # Large batch: stream x in (block_b, D) tiles. Weights/biases use constant
    # index_maps (block index never changes), so they are fetched once and stay
    # resident; only x and the lane-dense output row are streamed per step.
    num_tiles = pl.cdiv(B, block_b)
    B_pad = num_tiles * block_b
    if B_pad != B:
        x = jnp.pad(x, ((0, B_pad - B), (0, 0)))  # ragged batch -> zero-pad

    out = pl.pallas_call(
        mlp_critic_kernel,
        out_shape=jax.ShapeDtypeStruct((1, B_pad), jnp.float32),
        grid_spec=pltpu.PrefetchScalarGridSpec(
            num_scalar_prefetch=0,
            grid=(num_tiles,),
            in_specs=[
                pl.BlockSpec((block_b, D), lambda i: (i, 0)),  # x tile (streamed)
                pl.BlockSpec((D, H1), lambda i: (0, 0)),       # w1 (resident)
                pl.BlockSpec((1, H1), lambda i: (0, 0)),       # b1
                pl.BlockSpec((H1, H2), lambda i: (0, 0)),      # w2
                pl.BlockSpec((1, H2), lambda i: (0, 0)),       # b2
                pl.BlockSpec((1, H2), lambda i: (0, 0)),       # w3 as a row
                pl.BlockSpec((1, 1), lambda i: (0, 0)),        # b3
            ],
            # Lane-dense output: one (1, block_b) row per grid step.
            out_specs=pl.BlockSpec((1, block_b), lambda i: (0, i)),
        ),
        compiler_params=pltpu.CompilerParams(
            dimension_semantics=("parallel",)),  # v7x: shards batch over both TCs
    )(x, w1, b1, w2, b2, w3_row, b3_11)

    return out.reshape(B_pad, 1)[:B]


def init_mlp_critic_params(key, input_size, hidden_sizes, num_outputs=1):
    """Deterministic init mimicking torch nn.Linear default (U[-1/sqrt(fan_in), +])."""
    sizes = [input_size, *hidden_sizes, num_outputs]
    params = {}
    for li, (fan_in, fan_out) in enumerate(zip(sizes[:-1], sizes[1:]), start=1):
        key, kw, kb = jax.random.split(key, 3)
        bound = 1.0 / (fan_in ** 0.5)
        params[f"w{li}"] = jax.random.uniform(
            kw, (fan_in, fan_out), jnp.float32, -bound, bound)
        params[f"b{li}"] = jax.random.uniform(
            kb, (1, fan_out), jnp.float32, -bound, bound)
    return params


def mlp_critic_reference(x, params):
    h = x @ params["w1"] + params["b1"]
    h = jnp.where(h > 0, h, jnp.exp(h) - 1.0)
    h = h @ params["w2"] + params["b2"]
    h = jnp.where(h > 0, h, jnp.exp(h) - 1.0)
    return h @ params["w3"] + params["b3"]


if __name__ == "__main__":
    key = jax.random.PRNGKey(0)
    kx, kx2, kp = jax.random.split(key, 3)

    D = 16                       # observation dim (input_shape=(16,))
    hidden_sizes = [32, 32]      # MLPCritic hidden layers
    num_outputs = 1              # critic value head
    params = init_mlp_critic_params(kp, D, hidden_sizes, num_outputs)

    # 1) Small-batch (gridless, single VMEM block) path.
    B_small = 8
    x_small = jax.random.normal(kx, (B_small, D), jnp.float32)
    out_small = jax.block_until_ready(mlp_critic_forward(x_small, params))
    ref_small = mlp_critic_reference(x_small, params)
    assert out_small.shape == (B_small, num_outputs)
    assert jnp.allclose(out_small, ref_small, atol=1e-5, rtol=1e-5), \
        "small-batch mismatch vs reference"

    # 2) Tiled path: ragged batch, multi-step 'parallel' grid, lane-dense output
    #    blocks of 128 (exercises padding + streaming pipeline).
    B_big = 300
    x_big = jax.random.normal(kx2, (B_big, D), jnp.float32)
    out_big = jax.block_until_ready(
        mlp_critic_forward(x_big, params, block_b=128))
    ref_big = mlp_critic_reference(x_big, params)
    assert out_big.shape == (B_big, num_outputs)
    assert jnp.allclose(out_big, ref_big, atol=1e-5, rtol=1e-5), \
        "tiled-batch mismatch vs reference"

    print("KERNEL_OK")
</pallas_src>

<mosaic_0001>
module attributes {stable_mosaic.version = 11 : i64} {
  func.func @mlp_critic_kernel(%arg0: memref<8x16xf32, #tpu.memory_space<vmem>>, %arg1: memref<16x32xf32, #tpu.memory_space<vmem>>, %arg2: memref<1x32xf32, #tpu.memory_space<vmem>>, %arg3: memref<32x32xf32, #tpu.memory_space<vmem>>, %arg4: memref<1x32xf32, #tpu.memory_space<vmem>>, %arg5: memref<1x32xf32, #tpu.memory_space<vmem>>, %arg6: memref<1x1xf32, #tpu.memory_space<vmem>>, %arg7: memref<1x8xf32, #tpu.memory_space<vmem>>) attributes {dimension_semantics = [], scalar_prefetch = 0 : i64, scratch_operands = 0 : i64, tpu.core_type = #tpu.core_type<tc>} {
    %c0 = arith.constant 0 : index
    %c0_0 = arith.constant 0 : index
    %0 = vector.load %arg0[%c0, %c0_0] : memref<8x16xf32, #tpu.memory_space<vmem>>, vector<8x16xf32>
    %c0_1 = arith.constant 0 : index
    %c0_2 = arith.constant 0 : index
    %1 = vector.load %arg1[%c0_1, %c0_2] : memref<16x32xf32, #tpu.memory_space<vmem>>, vector<16x32xf32>
    %cst = arith.constant dense<0.000000e+00> : vector<8x32xf32>
    %2 = tpu.matmul %0, %1, %cst {dimension_numbers = #tpu.dot_dimension_numbers<[1], [0], [0], [1], [0, 0, 1, 1], [], []>} : vector<8x16xf32>, vector<16x32xf32>, vector<8x32xf32> -> vector<8x32xf32>
    %c0_3 = arith.constant 0 : index
    %c0_4 = arith.constant 0 : index
    %3 = vector.load %arg2[%c0_3, %c0_4] : memref<1x32xf32, #tpu.memory_space<vmem>>, vector<1x32xf32>
    %4 = vector.broadcast %3 : vector<1x32xf32> to vector<8x32xf32>
    %5 = arith.addf %2, %4 : vector<8x32xf32>
    %cst_5 = arith.constant 0.000000e+00 : f32
    %6 = vector.broadcast %cst_5 : f32 to vector<8x32xf32>
    %7 = arith.cmpf ogt, %5, %6 : vector<8x32xf32>
    %8 = math.exp %5 : vector<8x32xf32>
    %cst_6 = arith.constant 1.000000e+00 : f32
    %9 = vector.broadcast %cst_6 : f32 to vector<8x32xf32>
    %10 = arith.subf %8, %9 : vector<8x32xf32>
    %11 = arith.select %7, %5, %10 : vector<8x32xi1>, vector<8x32xf32>
    %c0_7 = arith.constant 0 : index
    %c0_8 = arith.constant 0 : index
    %12 = vector.load %arg3[%c0_7, %c0_8] : memref<32x32xf32, #tpu.memory_space<vmem>>, vector<32x32xf32>
    %cst_9 = arith.constant dense<0.000000e+00> : vector<8x32xf32>
    %13 = tpu.matmul %11, %12, %cst_9 {dimension_numbers = #tpu.dot_dimension_numbers<[1], [0], [0], [1], [0, 0, 1, 1], [], []>} : vector<8x32xf32>, vector<32x32xf32>, vector<8x32xf32> -> vector<8x32xf32>
    %c0_10 = arith.constant 0 : index
    %c0_11 = arith.constant 0 : index
    %14 = vector.load %arg4[%c0_10, %c0_11] : memref<1x32xf32, #tpu.memory_space<vmem>>, vector<1x32xf32>
    %15 = vector.broadcast %14 : vector<1x32xf32> to vector<8x32xf32>
    %16 = arith.addf %13, %15 : vector<8x32xf32>
    %cst_12 = arith.constant 0.000000e+00 : f32
    %17 = vector.broadcast %cst_12 : f32 to vector<8x32xf32>
    %18 = arith.cmpf ogt, %16, %17 : vector<8x32xf32>
    %19 = math.exp %16 : vector<8x32xf32>
    %cst_13 = arith.constant 1.000000e+00 : f32
    %20 = vector.broadcast %cst_13 : f32 to vector<8x32xf32>
    %21 = arith.subf %19, %20 : vector<8x32xf32>
    %22 = arith.select %18, %16, %21 : vector<8x32xi1>, vector<8x32xf32>
    %c0_14 = arith.constant 0 : index
    %c0_15 = arith.constant 0 : index
    %23 = vector.load %arg5[%c0_14, %c0_15] : memref<1x32xf32, #tpu.memory_space<vmem>>, vector<1x32xf32>
    %24 = tpu.transpose %22, [1, 0] : vector<8x32xf32> -> vector<32x8xf32>
    %cst_16 = arith.constant dense<0.000000e+00> : vector<1x8xf32>
    %25 = tpu.matmul %23, %24, %cst_16 {dimension_numbers = #tpu.dot_dimension_numbers<[1], [0], [0], [1], [0, 0, 1, 1], [], []>} : vector<1x32xf32>, vector<32x8xf32>, vector<1x8xf32> -> vector<1x8xf32>
    %c0_17 = arith.constant 0 : index
    %c0_18 = arith.constant 0 : index
    %26 = vector.load %arg6[%c0_17, %c0_18] : memref<1x1xf32, #tpu.memory_space<vmem>>, vector<1x1xf32>
    %27 = vector.broadcast %26 : vector<1x1xf32> to vector<1x8xf32>
    %28 = arith.addf %25, %27 : vector<1x8xf32>
    %c0_19 = arith.constant 0 : index
    %c0_20 = arith.constant 0 : index
    %29 = vector.load %arg7[%c0_19, %c0_20] : memref<1x8xf32, #tpu.memory_space<vmem>>, vector<1x8xf32>
    tpu.vector_store %arg7[%c0_19, %c0_20], %28 {strides = array<i32>} : memref<1x8xf32, #tpu.memory_space<vmem>>, vector<1x8xf32>,
    return
  }
}

</mosaic_0001>

<bundles_post_ra>
// kernel: mlp_critic_forward.1
= control target key start
LH: loop header
LB: loop body
LE: loop exit
PB: predicated region body
PF: predicated region fallthrough
CT: control target
= control target key end

     0   :  { %s397_s0 = inlined_call_operand.hbm [shape: f32[8,16], index: 0, kind: input, shape index: {}]   ;;  %s398_s1 = inlined_call_operand.hbm [shape: f32[16,32], index: 1, kind: input, shape index: {}]   ;;  %s399_s2 = inlined_call_operand.vmem [shape: f32[1,32], index: 2, kind: input, shape index: {}]   ;;  %s400_s3 = inlined_call_operand.hbm [shape: f32[32,32], index: 3, kind: input, shape index: {}]   ;;  %s401_s4 = inlined_call_operand.vmem [shape: f32[1,32], index: 4, kind: input, shape index: {}]   ;;  %s402_s5 = inlined_call_operand.vmem [shape: f32[1,32], index: 5, kind: input, shape index: {}]   ;;  %s403_s6 = inlined_call_operand.<no memory space> [shape: f32[1,1], index: 6, kind: input, shape index: {}]   ;;  %s404_s7 = inlined_call_operand.hbm [shape: f32[1,8], index: 7, kind: output, shape index: {}]  }
   0x1   :  { %v12_v0 = vstv %s403_s6 }
   0x2   :  { %13 = vst [vmem:[#allocation2] sm:$0x1] %v12_v0 }
   0x3   :  { %14 = vsyncpa [#allocation4], 0 }
   0x4   :  { %15 = vsyncpa [#allocation7], 0  ;;  %s32_s28 = sshll.u32 %s398_s1, 4  ;;  %s33_s28 = int_to_ptr.hbm [resolvable:$true] %s32_s28 }
   0x5   :  { %16 = vsyncpa [#allocation5], 0  ;;  %s323_s29 = smov [#allocation6]   ;;  %s22_s10 = sshll.u32 %s397_s0, 4  ;;  %s23_s10 = int_to_ptr.hbm [resolvable:$true] %s22_s10 }
   0x6   :  { %s34_s30 = sshll.u32 %s323_s29, 4  ;;  %s324_s11 = smov 128   ;;  %s35_s30 = int_to_ptr.vmem [resolvable:$true] %s34_s30 }
   0x7   :  { %s325_s12 = smov 8   ;;  %s326_s6 = smov [#allocation3]  }
   0x8   :  { %40 = dma.hbm_to_vmem [thread:$0]  %s33_s28, 256, %s35_s30, [#allocation7], %s324_s11, %s324_s11, %s325_s12  }
   0x9   :  { %s24_s13 = sshll.u32 %s326_s6, 4  ;;  %s47_s16 = sshll.u32 %s400_s3, 4  ;;  %s25_s13 = int_to_ptr.vmem [resolvable:$true] %s24_s13  ;;  %s48_s16 = int_to_ptr.hbm [resolvable:$true] %s47_s16 }
   0xa   :  { %27 = dma.hbm_to_vmem [thread:$0]  %s23_s10, 128, %s25_s13, [#allocation4]  }
   0xb   :  { %s327_s1 = smov [#allocation8]  }
   0xc   :  { %s49_s17 = sshll.u32 %s327_s1, 4  ;;  %s50_s17 = int_to_ptr.vmem [resolvable:$true] %s49_s17 }
   0xd   :  { %55 = dma.hbm_to_vmem [thread:$0]  %s48_s16, 512, %s50_s17, [#allocation7], %s324_s11, %s324_s11, %s325_s12  }
   0xe   :  { %317 = dma.done.wait [#allocation4], 128  }
   0xf   :  { %318 = vsyncadd [#allocation4], 4294967168 }
  0x10   :  { %319 = dma.done.wait [#allocation7], 768  }
  0x11   :  { %320 = vsyncadd [#allocation7], 4294966528  ;;  %v76_v1 = vld [vmem:[#allocation6 + $0x8] sm:$0xff]  ;;  %v75_v2 = vld [vmem:[#allocation6] sm:$0xff]  ;;  %vm81_vm0 = vcmask 130048   ;;  %vm118_vm1 = vcmask 261120  }
  0x12   :  { %99 = vmatpush.msra.mxu0 %v76_v1  ;;  %v74_v3 = vld [vmem:[#allocation3] sm:$0xff]  ;;  %v113_v4 = vld [vmem:[#allocation8 + $0x18] sm:$0xff]  ;;  %v112_v5 = vld [vmem:[#allocation8 + $0x10] sm:$0xff]  ;;  %v328_v16 = vmov 0   ;;  %s329_s21 = smov [#allocation9]   ;;  %s190_s24 = sshll.u32 %s404_s7, 4  ;;  %s191_s24 = int_to_ptr.hbm [resolvable:$true] %s190_s24 }
  0x13   :  { %134 = vmatpush.msra.mxu1 %v113_v4  ;;  %v111_v6 = vld [vmem:[#allocation8 + $0x8] sm:$0xff]  ;;  %v110_v7 = vld [vmem:[#allocation8] sm:$0xff]  ;;  %214 = vset.pattern.permute.xlu0 %v328_v16  ;;  %vm181_vm4 = vcmask 57344  }
  0x14   :  { %100 = vmatpush.msra.mxu0 %v75_v2  ;;  %v215_v8 = vld [vmem:[%s399_s2] ss:$0 sm:$0xff] }
  0x15   :  { %201 = vmatmul.msk.f32.vlgmr.msra.gmra.mxu0 %vm81_vm0, %v74_v3  ;;  %135 = vmatpush.msra.mxu1 %v112_v5  ;;  %v148_v15 = vld [vmem:[#allocation2] sm:$0x1] }
  0x16   :  { %151 = vperm.xlu0 %214, %v148_v15   ;;  %v216_v17 = vld [vmem:[%s401_s4] ss:$0 sm:$0xff]  ;;  %s188_s4 = sshll.u32 %s329_s21, 4  ;;  %s189_s4 = int_to_ptr.vmem [resolvable:$true] %s188_s4 }
  0x17   :  { %136 = vmatpush.msra.mxu1 %v111_v6  ;;  %v147_v24 = vld [vmem:[%s402_s5] sm:$0x1] }
  0x19   :  { %137 = vmatpush.msra.mxu1 %v110_v7 }
  0x88   :  { %v152_v25 = vpop.permute.xlu0 %151 }
  0x89   :  { %v154_v26 = vperm.slane %v152_v25, 0 }
  0x92   :  { %v102_v9 = vpop.f32.mrf.mxu0 }
  0x93   :  { %v103_v10 = vadd.f32 %v215_v8, %v102_v9 }
  0x95   :  { %v106_v11 = vmul.f32 1.442695, %v103_v10  ;;  %vm105_vm2 = vcmp.gt.f32.partialorder %v103_v10, 0.0 }
  0x97   :  { %217 = vpow2.f32 %v106_v11 }
  0x9d   :  { %v218_v12 = vpop.eup %217 }
  0x9e   :  { %v202_v13 = vadd.f32 -1.0, %v218_v12 }
  0xa0   :  { %v109_v14 = vsel %vm105_vm2, %v103_v10, %v202_v13 }
  0xa1   :  { %203 = vmatmul.msk.f32.vlgmr.msra.gmra.mxu1 %vm118_vm1, %v109_v14 }
 0x11e   :  { %v139_v18 = vpop.f32.mrf.mxu1 }
 0x11f   :  { %v140_v19 = vadd.f32 %v216_v17, %v139_v18 }
 0x121   :  { %v143_v20 = vmul.f32 1.442695, %v140_v19  ;;  %vm142_vm3 = vcmp.gt.f32.partialorder %v140_v19, 0.0 }
 0x123   :  { %219 = vpow2.f32 %v143_v20 }
 0x129   :  { %v220_v21 = vpop.eup %219 }
 0x12a   :  { %v204_v22 = vadd.f32 -1.0, %v220_v21 }
 0x12c   :  { %v146_v23 = vsel %vm142_vm3, %v140_v19, %v204_v22 }
 0x12d   :  { %205 = vmatpush.xpose.msk.msra.mxu2 %vm118_vm1, %v146_v23 }
 0x130   :  { %206 = vmatmul.msk.f32.vlgmr.msra.gmra.mxu2 %vm118_vm1, %v147_v24 }
 0x1b3   :  { %v178_v27 = vpop.f32.mrf.mxu2 }
 0x1b4   :  { %v179_v28 = vadd.f32 %v178_v27, %v154_v26 }
 0x1b6   :  { %182 = vst.msk [vmem:[#allocation9] sm:$0x1] %vm181_vm4, %v179_v28 }
 0x1b7   :  { %193 = dma.vmem_to_hbm [thread:$0]  %s189_s4, 16, %s191_s24, [#allocation5]  }
 0x1b8   :  { %321 = dma.done.wait [#allocation5], 16  }
 0x1b9   :  { %322 = vsyncadd [#allocation5], 4294967280 }
 0x1ba   :  { %198 = vsyncpa [#allocation4], 1 }
 0x1bb   :  { %199 = vsyncpa [#allocation7], 1 }
 0x1bc   :  { %200 = vsyncpa [#allocation5], 1 }

</bundles_post_ra>
